<compile_context>
chip_gen: v7x
topology: tpu7x:2x2x1
jax: 0.10.0
libtpu: 0.0.40
codegen_flags: <defaults>
</compile_context>

<pallas_src>
import functools

import jax
import jax.numpy as jnp
from jax import lax
from jax.experimental import pallas as pl
from jax.experimental.pallas import tpu as pltpu


def _round_up(x, m):
    return (x + m - 1) // m * m


def sdf_wrapper_kernel(slab_ref, w1_ref, w2_ref, b2_ref, wh_ref, bh_ref,
                       out_ref, part_ref, *, n_valid, tile_m):
    """One tile of TILE_M points, channel-major [C, TILE_M] layout.

    slab_ref rows: 0-2 pts xyz, 3 ones, 4-6 rgb ground truth, 7 mask.
    out_ref  rows: 0-2 predicted rgb, 3-5 predicted gradients.
    """
    i = pl.program_id(0)
    cdt = w1_ref.dtype          # MXU operand dtype (f32 or bf16)

    # ---- layer 1 on the MXU: K=4 augmented matmul (bias folded via ones row) --
    x_aug = slab_ref[0:4, :].astype(cdt)                              # (4, T)
    h = jnp.dot(w1_ref[...], x_aug, preferred_element_type=jnp.float32)  # (H, T)
    h = jnp.maximum(h, 0.0)

    # ---- layer 2 --------------------------------------------------------------
    h = jnp.dot(w2_ref[...], h.astype(cdt),
                preferred_element_type=jnp.float32) + b2_ref[...]
    h = jnp.maximum(h, 0.0)                                           # (H, T)

    # ---- fused rgb+grad head: one (6,H) @ (H,T) matmul ------------------------
    head = jnp.dot(wh_ref[...], h.astype(cdt),
                   preferred_element_type=jnp.float32) + bh_ref[...]  # (6, T)

    # sigmoid only on the rgb rows; full-tile lane-dense store of the (6,T) slab
    row = lax.broadcasted_iota(jnp.int32, head.shape, 0)
    out = jnp.where(row < 3, jax.nn.sigmoid(head), head)              # f32
    out_ref[...] = out.astype(out_ref.dtype)

    rgb = out[0:3, :]                                                 # f32 (pre-cast)
    grad = head[3:6, :]
    # TODO(synk): real gradients come from autograd of the SDF w.r.t. points;
    # here they are a synthetic linear head of the same shape.

    # ---- lane validity (excludes padded columns of the last tile) -------------
    lane = lax.broadcasted_iota(jnp.int32, (1, tile_m), 1)
    valid = ((i * tile_m + lane) < n_valid).astype(jnp.float32)       # (1, T)

    # ---- per-tile partial sums (all f32) --------------------------------------
    gsq = jnp.sum(grad * grad, axis=0, keepdims=True)                 # (1, T)
    eik = jnp.sum(((jnp.sqrt(gsq) - 1.0) ** 2) * valid, keepdims=True)  # (1, 1)

    m = slab_ref[7:8, :].astype(jnp.float32)                          # 0 on pads
    diff = rgb - slab_ref[4:7, :].astype(jnp.float32)
    sse = jnp.sum((diff * diff) * m, keepdims=True)                   # (1, 1)
    cnt = jnp.sum(m, keepdims=True)                                   # (1, 1)

    part_ref[0:1, :] = jnp.broadcast_to(eik, (1, 128))
    part_ref[1:2, :] = jnp.broadcast_to(sse, (1, 128))
    part_ref[2:3, :] = jnp.broadcast_to(cnt, (1, 128))


def network_wrapper_forward(batch, params, *, tile_m=8192,
                            io_dtype=jnp.bfloat16, mxu_bf16=True,
                            return_maps=True):
    """Mirrors NetworkWrapper.forward: returns (ret, loss, scalar_stats, image_stats)."""
    pts = batch['wpts']            # [B, N, 3] sampled world points
    rgb_gt = batch['rgb']          # [B, N, 3] ground-truth pixel colors
    mask = batch['mask_at_box']    # [B, N]    bool

    B, N, _ = pts.shape
    M = B * N
    w1, b1, w2, b2, wr, br, wg, bg = params
    H = w1.shape[1]

    # ---- tile selection --------------------------------------------------------
    tile = _round_up(min(tile_m, _round_up(M, 128)), 128)
    # prefer >=2 tiles so the 'parallel' grid axis feeds both TensorCores (v7x)
    if _round_up(M, tile) // tile < 2 and tile > 128:
        tile = _round_up((tile + 1) // 2, 128)
    M_pad = _round_up(M, tile)
    num_tiles = M_pad // tile
    pad = M_pad - M

    # ---- single channel-major (8, M_pad) input slab ----------------------------
    # rows: [px, py, pz, 1, r, g, b, mask]; padded lanes are zero (mask row 0 too).
    slab = jnp.concatenate(
        [pts.reshape(M, 3).T.astype(jnp.float32),
         jnp.ones((1, M), jnp.float32),
         rgb_gt.reshape(M, 3).T.astype(jnp.float32),
         mask.reshape(1, M).astype(jnp.float32)], axis=0)
    slab = jnp.pad(slab, ((0, 0), (0, pad))).astype(io_dtype)
    # TODO(synk): an upstream channel-major data pipeline would remove this
    # wrapper-side transpose/concat entirely.

    # ---- weights: transposed, bias folded into layer-1, heads fused ------------
    mxu_dtype = jnp.bfloat16 if mxu_bf16 else jnp.float32
    w1_aug = jnp.concatenate([w1.T, b1.reshape(H, 1)], axis=1).astype(mxu_dtype)  # (H,4)
    w2_t = w2.T.astype(mxu_dtype)                                                 # (H,H)
    b2_t = b2.reshape(H, 1).astype(jnp.float32)                                   # (H,1)
    wh_t = jnp.concatenate([wr.T, wg.T], axis=0).astype(mxu_dtype)                # (6,H)
    bh_t = jnp.concatenate([br, bg], axis=1).reshape(6, 1).astype(jnp.float32)    # (6,1)

    const_spec = lambda shp: pl.BlockSpec(shp, lambda i: (0, 0))
    in_specs = [pl.BlockSpec((8, tile), lambda i: (0, i)),
                const_spec((H, 4)), const_spec((H, H)), const_spec((H, 1)),
                const_spec((6, H)), const_spec((6, 1))]
    out_specs = (pl.BlockSpec((6, tile), lambda i: (0, i)),
                 pl.BlockSpec((None, 3, 128), lambda i: (i, 0, 0)))
    out_shape = (jax.ShapeDtypeStruct((6, M_pad), io_dtype),
                 jax.ShapeDtypeStruct((num_tiles, 3, 128), jnp.float32))

    io_bytes = jnp.dtype(io_dtype).itemsize
    vmem_est = (2 * (8 + 6) * tile * io_bytes       # double-buffered in/out slabs
                + 8 * H * tile * 4                  # f32 activations / temporaries
                + (1 << 20))
    vmem_limit = int(min(64 << 20, max(32 << 20, 2 * vmem_est)))

    flops = 2 * M_pad * (4 * H + H * H + 6 * H) + 40 * M_pad
    bytes_accessed = int(io_bytes * M_pad * (8 + 6)
                         + 4 * num_tiles * 3 * 128
                         + 2 * (w1_aug.size + w2_t.size + wh_t.size)
                         + 4 * (b2_t.size + bh_t.size))

    kernel = functools.partial(sdf_wrapper_kernel, n_valid=M, tile_m=tile)

    out_slab, parts = pl.pallas_call(
        kernel,
        grid=(num_tiles,),
        in_specs=in_specs,
        out_specs=out_specs,
        out_shape=out_shape,
        compiler_params=pltpu.CompilerParams(
            dimension_semantics=("parallel",),
            vmem_limit_bytes=vmem_limit),
        cost_estimate=pl.CostEstimate(flops=flops,
                                      transcendentals=6 * M_pad,
                                      bytes_accessed=bytes_accessed),
    )(slab, w1_aug, w2_t, b2_t, wh_t, bh_t)

    # tiny final reduce kept in JAX so the grid axis stays 'parallel' (v7x 2 TCs)
    sums = jnp.sum(parts[:, :, 0], axis=0)                 # (3,) -> eik, sse, cnt
    gl = sums[0] / float(M)
    # guard against an all-false mask (the torch reference would return NaN here)
    il = sums[1] / (3.0 * jnp.maximum(sums[2], 1.0))
    loss = 0.1 * gl + il

    ret = {}
    if return_maps:
        ret['rgb_map'] = out_slab[0:3, :M].T.reshape(B, N, 3)
        ret['gradients'] = out_slab[3:6, :M].T.reshape(B, N, 3)
    else:
        # channel-major, padded fused output (skips minor-dim-3 transposes)
        ret['rgb_and_gradients_cm'] = out_slab
    # TODO(synk): 'rgb0' (coarse pass) / img_loss0 branch is absent: the
    # synthetic renderer has no coarse pass.
    scalar_stats = {'grad_loss': gl, 'img_loss': il, 'loss': loss}
    image_stats = {}
    return ret, loss, scalar_stats, image_stats


if __name__ == "__main__":
    B, N, H = 2, 150, 32          # M = 300 -> exercises multi-tile path + padding
    key = jax.random.PRNGKey(0)
    ks = jax.random.split(key, 11)

    pts = jax.random.normal(ks[0], (B, N, 3), jnp.float32)
    rgb = jax.random.uniform(ks[1], (B, N, 3), jnp.float32)
    mask = jax.random.uniform(ks[2], (B, N), jnp.float32) > 0.3

    w1 = (jax.random.normal(ks[3], (3, H)) * 0.5).astype(jnp.float32)
    b1 = (jax.random.normal(ks[4], (1, H)) * 0.1).astype(jnp.float32)
    w2 = (jax.random.normal(ks[5], (H, H)) / jnp.sqrt(H)).astype(jnp.float32)
    b2 = (jax.random.normal(ks[6], (1, H)) * 0.1).astype(jnp.float32)
    wr = (jax.random.normal(ks[7], (H, 3)) / jnp.sqrt(H)).astype(jnp.float32)
    br = (jax.random.normal(ks[8], (1, 3)) * 0.1).astype(jnp.float32)
    wg = (jax.random.normal(ks[9], (H, 3)) / jnp.sqrt(H)).astype(jnp.float32)
    bg = (jax.random.normal(ks[10], (1, 3)) * 0.1).astype(jnp.float32)
    params = (w1, b1, w2, b2, wr, br, wg, bg)

    batch = {'wpts': pts, 'rgb': rgb, 'mask_at_box': mask}

    # --- plain-JAX reference ---------------------------------------------------
    p = pts.reshape(-1, 3)
    hh = jnp.maximum(p @ w1 + b1, 0.0)
    hh = jnp.maximum(hh @ w2 + b2, 0.0)
    rgbm_ref = jax.nn.sigmoid(hh @ wr + br)
    grad_ref = hh @ wg + bg
    gl_ref = jnp.mean((jnp.linalg.norm(grad_ref, axis=-1) - 1.0) ** 2)
    mflat = mask.reshape(-1).astype(jnp.float32)
    diff = rgbm_ref - rgb.reshape(-1, 3)
    il_ref = jnp.sum((diff ** 2) * mflat[:, None]) / (3.0 * jnp.sum(mflat))
    loss_ref = 0.1 * gl_ref + il_ref

    # --- run 1: accuracy path (f32 I/O + f32 MXU), small tile -> 3 tiles + pad --
    ret, loss, scalar_stats, image_stats = network_wrapper_forward(
        batch, params, tile_m=128, io_dtype=jnp.float32, mxu_bf16=False)
    jax.block_until_ready((ret, loss, scalar_stats))

    # tolerances cover MXU default-precision differences between XLA and Mosaic
    assert jnp.allclose(scalar_stats['grad_loss'], gl_ref, rtol=1e-2, atol=5e-3)
    assert jnp.allclose(scalar_stats['img_loss'], il_ref, rtol=1e-2, atol=5e-3)
    assert jnp.allclose(loss, loss_ref, rtol=1e-2, atol=5e-3)
    assert jnp.allclose(ret['rgb_map'], rgbm_ref.reshape(B, N, 3), rtol=1e-2, atol=1e-2)
    assert jnp.allclose(ret['gradients'], grad_ref.reshape(B, N, 3), rtol=1e-2, atol=1e-2)
    assert ret['rgb_map'].shape == (B, N, 3) and ret['gradients'].shape == (B, N, 3)

    # --- run 2: default perf path (bf16 I/O + bf16 MXU operands, tile heuristic)
    ret2, loss2, scalar_stats2, _ = network_wrapper_forward(batch, params)
    jax.block_until_ready((ret2, loss2, scalar_stats2))
    assert bool(jnp.isfinite(loss2))
    # bf16 I/O quantizes inputs/outputs (~3 significant digits) -> loose check
    assert jnp.allclose(loss2, loss_ref, rtol=1e-1, atol=2e-2)
    assert ret2['rgb_map'].shape == (B, N, 3) and ret2['gradients'].shape == (B, N, 3)

    print("KERNEL_OK")
</pallas_src>

<mosaic_0001>
module attributes {stable_mosaic.version = 11 : i64} {
  func.func @sdf_wrapper_kernel(%arg0: i32, %arg1: memref<8x128xf32, #tpu.memory_space<vmem>>, %arg2: memref<32x4xf32, #tpu.memory_space<vmem>>, %arg3: memref<32x32xf32, #tpu.memory_space<vmem>>, %arg4: memref<32x1xf32, #tpu.memory_space<vmem>>, %arg5: memref<6x32xf32, #tpu.memory_space<vmem>>, %arg6: memref<6x1xf32, #tpu.memory_space<vmem>>, %arg7: memref<6x128xf32, #tpu.memory_space<vmem>>, %arg8: memref<1x3x128xf32, #tpu.memory_space<vmem>>) attributes {dimension_semantics = [#tpu.dimension_semantics<parallel>], iteration_bounds = array<i64: 3>, scalar_prefetch = 0 : i64, scratch_operands = 0 : i64, tpu.core_type = #tpu.core_type<tc>, window_params = [{transform_indices = @transform_0, window_bounds = array<i64: 8, 128>}, {pipeline_mode = #tpu.pipeline_mode<synchronous>, transform_indices = @transform_1, window_bounds = array<i64: 32, 4>}, {pipeline_mode = #tpu.pipeline_mode<synchronous>, transform_indices = @transform_2, window_bounds = array<i64: 32, 32>}, {pipeline_mode = #tpu.pipeline_mode<synchronous>, transform_indices = @transform_3, window_bounds = array<i64: 32, 1>}, {pipeline_mode = #tpu.pipeline_mode<synchronous>, transform_indices = @transform_4, window_bounds = array<i64: 6, 32>}, {pipeline_mode = #tpu.pipeline_mode<synchronous>, transform_indices = @transform_5, window_bounds = array<i64: 6, 1>}, {transform_indices = @transform_6, window_bounds = array<i64: 6, 128>}, {transform_indices = @transform_7, window_bounds = array<i64: 1, 3, 128>}]} {
    %c0 = arith.constant 0 : index
    %c0_0 = arith.constant 0 : index
    %0 = vector.load %arg1[%c0, %c0_0] : memref<8x128xf32, #tpu.memory_space<vmem>>, vector<4x128xf32>
    %c0_1 = arith.constant 0 : index
    %c0_2 = arith.constant 0 : index
    %1 = vector.load %arg2[%c0_1, %c0_2] : memref<32x4xf32, #tpu.memory_space<vmem>>, vector<32x4xf32>
    %cst = arith.constant dense<0.000000e+00> : vector<32x128xf32>
    %2 = tpu.matmul %1, %0, %cst {dimension_numbers = #tpu.dot_dimension_numbers<[1], [0], [0], [1], [0, 0, 1, 1], [], []>} : vector<32x4xf32>, vector<4x128xf32>, vector<32x128xf32> -> vector<32x128xf32>
    %cst_3 = arith.constant 0.000000e+00 : f32
    %3 = vector.broadcast %cst_3 : f32 to vector<32x128xf32>
    %4 = arith.maximumf %2, %3 : vector<32x128xf32>
    %c0_4 = arith.constant 0 : index
    %c0_5 = arith.constant 0 : index
    %5 = vector.load %arg3[%c0_4, %c0_5] : memref<32x32xf32, #tpu.memory_space<vmem>>, vector<32x32xf32>
    %cst_6 = arith.constant dense<0.000000e+00> : vector<32x128xf32>
    %6 = tpu.matmul %5, %4, %cst_6 {dimension_numbers = #tpu.dot_dimension_numbers<[1], [0], [0], [1], [0, 0, 1, 1], [], []>} : vector<32x32xf32>, vector<32x128xf32>, vector<32x128xf32> -> vector<32x128xf32>
    %c0_7 = arith.constant 0 : index
    %c0_8 = arith.constant 0 : index
    %7 = vector.load %arg4[%c0_7, %c0_8] : memref<32x1xf32, #tpu.memory_space<vmem>>, vector<32x1xf32>
    %8 = vector.broadcast %7 : vector<32x1xf32> to vector<32x128xf32>
    %9 = arith.addf %6, %8 : vector<32x128xf32>
    %cst_9 = arith.constant 0.000000e+00 : f32
    %10 = vector.broadcast %cst_9 : f32 to vector<32x128xf32>
    %11 = arith.maximumf %9, %10 : vector<32x128xf32>
    %c0_10 = arith.constant 0 : index
    %c0_11 = arith.constant 0 : index
    %12 = vector.load %arg5[%c0_10, %c0_11] : memref<6x32xf32, #tpu.memory_space<vmem>>, vector<6x32xf32>
    %cst_12 = arith.constant dense<0.000000e+00> : vector<6x128xf32>
    %13 = tpu.matmul %12, %11, %cst_12 {dimension_numbers = #tpu.dot_dimension_numbers<[1], [0], [0], [1], [0, 0, 1, 1], [], []>} : vector<6x32xf32>, vector<32x128xf32>, vector<6x128xf32> -> vector<6x128xf32>
    %c0_13 = arith.constant 0 : index
    %c0_14 = arith.constant 0 : index
    %14 = vector.load %arg6[%c0_13, %c0_14] : memref<6x1xf32, #tpu.memory_space<vmem>>, vector<6x1xf32>
    %15 = vector.broadcast %14 : vector<6x1xf32> to vector<6x128xf32>
    %16 = arith.addf %13, %15 : vector<6x128xf32>
    %17 = tpu.iota {dimensions = array<i32: 0>} : vector<6x128xi32>
    %c3_i32 = arith.constant 3 : i32
    %18 = vector.broadcast %c3_i32 : i32 to vector<6x128xi32>
    %19 = arith.cmpi slt, %17, %18 : vector<6x128xi32>
    %20 = arith.negf %16 : vector<6x128xf32>
    %21 = math.exp %20 : vector<6x128xf32>
    %cst_15 = arith.constant 1.000000e+00 : f32
    %22 = vector.broadcast %cst_15 : f32 to vector<6x128xf32>
    %23 = arith.addf %22, %21 : vector<6x128xf32>
    %24 = arith.divf %22, %23 : vector<6x128xf32>
    %25 = arith.select %19, %24, %16 : vector<6x128xi1>, vector<6x128xf32>
    %c0_16 = arith.constant 0 : index
    %c0_17 = arith.constant 0 : index
    %26 = vector.load %arg7[%c0_16, %c0_17] : memref<6x128xf32, #tpu.memory_space<vmem>>, vector<6x128xf32>
    tpu.vector_store %arg7[%c0_16, %c0_17], %25 {strides = array<i32>} : memref<6x128xf32, #tpu.memory_space<vmem>>, vector<6x128xf32>,
    %27 = vector.extract_strided_slice %25 {offsets = [0, 0], sizes = [3, 128], strides = [1, 1]} : vector<6x128xf32> to vector<3x128xf32>
    %28 = vector.extract_strided_slice %16 {offsets = [3, 0], sizes = [3, 128], strides = [1, 1]} : vector<6x128xf32> to vector<3x128xf32>
    %29 = tpu.iota {dimensions = array<i32: 1>} : vector<1x128xi32>
    %c128_i32 = arith.constant 128 : i32
    %30 = arith.muli %arg0, %c128_i32 : i32
    %31 = vector.broadcast %30 : i32 to vector<1x128xi32>
    %32 = arith.addi %31, %29 : vector<1x128xi32>
    %c300_i32 = arith.constant 300 : i32
    %33 = vector.broadcast %c300_i32 : i32 to vector<1x128xi32>
    %34 = arith.cmpi slt, %32, %33 : vector<1x128xi32>
    %35 = arith.extui %34 : vector<1x128xi1> to vector<1x128xi32>
    %36 = arith.sitofp %35 : vector<1x128xi32> to vector<1x128xf32>
    %37 = arith.mulf %28, %28 : vector<3x128xf32>
    %cst_18 = arith.constant dense<0.000000e+00> : vector<128xf32>
    %38 = vector.multi_reduction <add>, %37, %cst_18 [0] : vector<3x128xf32> to vector<128xf32>
    %39 = vector.shape_cast %38 : vector<128xf32> to vector<1x128xf32>
    %40 = math.sqrt %39 : vector<1x128xf32>
    %cst_19 = arith.constant 1.000000e+00 : f32
    %41 = vector.broadcast %cst_19 : f32 to vector<1x128xf32>
    %42 = arith.subf %40, %41 : vector<1x128xf32>
    %43 = arith.mulf %42, %42 : vector<1x128xf32>
    %44 = arith.mulf %43, %36 : vector<1x128xf32>
    %45 = vector.shape_cast %44 : vector<1x128xf32> to vector<1x1x128xf32>
    %cst_20 = arith.constant dense<0.000000e+00> : vector<1xf32>
    %46 = vector.multi_reduction <add>, %45, %cst_20 [1, 2] : vector<1x1x128xf32> to vector<1xf32>
    %47 = vector.shape_cast %46 : vector<1xf32> to vector<1x1x1xf32>
    %48 = vector.extract %47[0, 0, 0] : f32 from vector<1x1x1xf32>
    %49 = vector.broadcast %48 : f32 to vector<1x1xf32>
    %c7 = arith.constant 7 : index
    %c0_21 = arith.constant 0 : index
    %50 = vector.load %arg1[%c7, %c0_21] : memref<8x128xf32, #tpu.memory_space<vmem>>, vector<1x128xf32>
    %c4 = arith.constant 4 : index
    %c0_22 = arith.constant 0 : index
    %51 = vector.load %arg1[%c4, %c0_22] : memref<8x128xf32, #tpu.memory_space<vmem>>, vector<3x128xf32>
    %52 = arith.subf %27, %51 : vector<3x128xf32>
    %53 = arith.mulf %52, %52 : vector<3x128xf32>
    %54 = vector.broadcast %50 : vector<1x128xf32> to vector<3x128xf32>
    %55 = arith.mulf %53, %54 : vector<3x128xf32>
    %56 = vector.shape_cast %55 : vector<3x128xf32> to vector<1x3x128xf32>
    %cst_23 = arith.constant dense<0.000000e+00> : vector<1xf32>
    %57 = vector.multi_reduction <add>, %56, %cst_23 [1, 2] : vector<1x3x128xf32> to vector<1xf32>
    %58 = vector.shape_cast %57 : vector<1xf32> to vector<1x1x1xf32>
    %59 = vector.extract %58[0, 0, 0] : f32 from vector<1x1x1xf32>
    %60 = vector.broadcast %59 : f32 to vector<1x1xf32>
    %61 = vector.shape_cast %50 : vector<1x128xf32> to vector<1x1x128xf32>
    %cst_24 = arith.constant dense<0.000000e+00> : vector<1xf32>
    %62 = vector.multi_reduction <add>, %61, %cst_24 [1, 2] : vector<1x1x128xf32> to vector<1xf32>
    %63 = vector.shape_cast %62 : vector<1xf32> to vector<1x1x1xf32>
    %64 = vector.extract %63[0, 0, 0] : f32 from vector<1x1x1xf32>
    %65 = vector.broadcast %64 : f32 to vector<1x1xf32>
    %66 = vector.shape_cast %49 : vector<1x1xf32> to vector<1x1xf32>
    %67 = vector.broadcast %66 : vector<1x1xf32> to vector<1x128xf32>
    %c0_25 = arith.constant 0 : index
    %c0_26 = arith.constant 0 : index
    %c0_27 = arith.constant 0 : index
    %68 = vector.load %arg8[%c0_25, %c0_26, %c0_27] : memref<1x3x128xf32, #tpu.memory_space<vmem>>, vector<1x1x128xf32>
    %69 = vector.shape_cast %68 : vector<1x1x128xf32> to vector<1x128xf32>
    %70 = vector.shape_cast %67 : vector<1x128xf32> to vector<1x1x128xf32>
    tpu.vector_store %arg8[%c0_25, %c0_26, %c0_27], %70 {strides = array<i32>} : memref<1x3x128xf32, #tpu.memory_space<vmem>>, vector<1x1x128xf32>,
    %71 = vector.shape_cast %60 : vector<1x1xf32> to vector<1x1xf32>
    %72 = vector.broadcast %71 : vector<1x1xf32> to vector<1x128xf32>
    %c0_28 = arith.constant 0 : index
    %c1 = arith.constant 1 : index
    %c0_29 = arith.constant 0 : index
    %73 = vector.load %arg8[%c0_28, %c1, %c0_29] : memref<1x3x128xf32, #tpu.memory_space<vmem>>, vector<1x1x128xf32>
    %74 = vector.shape_cast %73 : vector<1x1x128xf32> to vector<1x128xf32>
    %75 = vector.shape_cast %72 : vector<1x128xf32> to vector<1x1x128xf32>
    tpu.vector_store %arg8[%c0_28, %c1, %c0_29], %75 {strides = array<i32>} : memref<1x3x128xf32, #tpu.memory_space<vmem>>, vector<1x1x128xf32>,
    %76 = vector.shape_cast %65 : vector<1x1xf32> to vector<1x1xf32>
    %77 = vector.broadcast %76 : vector<1x1xf32> to vector<1x128xf32>
    %c0_30 = arith.constant 0 : index
    %c2 = arith.constant 2 : index
    %c0_31 = arith.constant 0 : index
    %78 = vector.load %arg8[%c0_30, %c2, %c0_31] : memref<1x3x128xf32, #tpu.memory_space<vmem>>, vector<1x1x128xf32>
    %79 = vector.shape_cast %78 : vector<1x1x128xf32> to vector<1x128xf32>
    %80 = vector.shape_cast %77 : vector<1x128xf32> to vector<1x1x128xf32>
    tpu.vector_store %arg8[%c0_30, %c2, %c0_31], %80 {strides = array<i32>} : memref<1x3x128xf32, #tpu.memory_space<vmem>>, vector<1x1x128xf32>,
    return
  }
  func.func @transform_0(%arg0: i32) -> (i32, i32) {
    %c0_i32 = arith.constant 0 : i32
    %c0_i32_0 = arith.constant 0 : i32
    return %c0_i32, %arg0 : i32, i32
  }
  func.func @transform_1(%arg0: i32) -> (i32, i32) {
    %c0_i32 = arith.constant 0 : i32
    %c0_i32_0 = arith.constant 0 : i32
    %c0_i32_1 = arith.constant 0 : i32
    return %c0_i32, %c0_i32_0 : i32, i32
  }
  func.func @transform_2(%arg0: i32) -> (i32, i32) {
    %c0_i32 = arith.constant 0 : i32
    %c0_i32_0 = arith.constant 0 : i32
    %c0_i32_1 = arith.constant 0 : i32
    return %c0_i32, %c0_i32_0 : i32, i32
  }
  func.func @transform_3(%arg0: i32) -> (i32, i32) {
    %c0_i32 = arith.constant 0 : i32
    %c0_i32_0 = arith.constant 0 : i32
    %c0_i32_1 = arith.constant 0 : i32
    return %c0_i32, %c0_i32_0 : i32, i32
  }
  func.func @transform_4(%arg0: i32) -> (i32, i32) {
    %c0_i32 = arith.constant 0 : i32
    %c0_i32_0 = arith.constant 0 : i32
    %c0_i32_1 = arith.constant 0 : i32
    return %c0_i32, %c0_i32_0 : i32, i32
  }
  func.func @transform_5(%arg0: i32) -> (i32, i32) {
    %c0_i32 = arith.constant 0 : i32
    %c0_i32_0 = arith.constant 0 : i32
    %c0_i32_1 = arith.constant 0 : i32
    return %c0_i32, %c0_i32_0 : i32, i32
  }
  func.func @transform_6(%arg0: i32) -> (i32, i32) {
    %c0_i32 = arith.constant 0 : i32
    %c0_i32_0 = arith.constant 0 : i32
    return %c0_i32, %arg0 : i32, i32
  }
  func.func @transform_7(%arg0: i32) -> (i32, i32, i32) {
    %c0_i32 = arith.constant 0 : i32
    %c0_i32_0 = arith.constant 0 : i32
    %c0_i32_1 = arith.constant 0 : i32
    return %arg0, %c0_i32, %c0_i32_0 : i32, i32, i32
  }
}

</mosaic_0001>

<bundles_post_ra>
// kernel: tpu_custom_call.1
= control target key start
LH: loop header
LB: loop body
LE: loop exit
PB: predicated region body
PF: predicated region fallthrough
CT: control target
= control target key end

     0   :  { %13 = vsyncpa [#allocation3], 0  ;;  %s1301_s0 = inlined_call_operand.vmem [shape: f32[8,384], index: 0, kind: input, shape index: {}]   ;;  %s1302_s1 = inlined_call_operand.vmem [shape: f32[32,4], index: 1, kind: input, shape index: {}]   ;;  %s1303_s2 = inlined_call_operand.vmem [shape: f32[32,32], index: 2, kind: input, shape index: {}]   ;;  %s1304_s3 = inlined_call_operand.vmem [shape: f32[32,1], index: 3, kind: input, shape index: {}]   ;;  %s1305_s4 = inlined_call_operand.vmem [shape: f32[6,32], index: 4, kind: input, shape index: {}]   ;;  %s1306_s5 = inlined_call_operand.vmem [shape: f32[6,1], index: 5, kind: input, shape index: {}]   ;;  %s1307_s6 = inlined_call_operand.hbm [shape: f32[6,384], index: 6, kind: output, shape index: {0}]   ;;  %s1308_s7 = inlined_call_operand.hbm [shape: f32[3,3,128], index: 7, kind: output, shape index: {1}]  }
   0x1   :  { %15 = vsyncpa [#allocation3 + $0x1], 0 }
   0x2   :  { %16 = vsyncpa [#allocation5], 0 }
   0x3   :  { %18 = vsyncpa [#allocation5 + $0x1], 0  ;;  %s1112_s24 = smov 0   ;;  %s1114_s25 = smov 0  }
   0x4   :  { %s1116_s26 = smov 0   ;;  %s1118_s27 = smov 0  }
   0x5 LB: > { %s1133_s28 = sadd.s32 4294967295, %s1064_s27   ;;  %s816_s29 = sadd.s32 4294967294, %s1064_s27   ;;  %s1064_s27 = sphi %s1118_s27, %s1314_s27   ;;  %s1060_s26 = sphi %s1116_s26, %s1313_s26   ;;  %s1056_s25 = sphi %s1114_s25, %s1312_s25   ;;  %s1052_s24 = sphi %s1112_s24, %s1311_s24  }
   0x6   : > { %s1137_s30 = sadd.s32 1, %s1064_s27   ;;  %s162_s8 = sadd.s32 1, %s1060_s26 }
   0x7   : > { %s159_s9 = ssub.s32 %s1064_s27, %s1137_s30  ;;  %p172_p0 = scmp.ne.s32.totalorder %s1060_s26, %s1056_s25 }
   0x8   : > { %p160_p1 = scmp.eq.s32.totalorder %s159_s9, 0  ;;  %p173_p2 = scmp.eq.s32.totalorder %s1133_s28, 2 }
   0x9   : > { %p178_p3 = scmp.ne.s32.totalorder %s1056_s25, %s1052_s24  ;;  %p179_p4 = scmp.eq.s32.totalorder %s816_s29, 2 }
   0xa   : > { %s1148_s10 = scalar_select %p160_p1, %s1060_s26, %s162_s8  }
   0xb   : > { %p1150_p5 = por %p173_p2, %p172_p0  ;;  %p1154_p6 = por %p179_p4, %p178_p3 }
   0xc   : > { %p819_p7 = scmp.ge.s32.totalorder %s1064_s27, 1  ;;  %p245_p8 = scmp.lt.s32.totalorder %s1064_s27, 4 }
   0xe   : > { %p246_p9 = pnand %p819_p7, %p245_p8 }
   0xf   : > { %p281_p10 = scmp.lt.s32.totalorder (!%p246_p9), %s1133_s28, 2  ;;  %v286_v0 = vld [vmem:[%s1302_s1] sm:$0xff] (!%p246_p9)  ;;  %vm290_vm0 = vcmask (!%p246_p9), 31744   ;;  %vm303_vm1 = vcmask (!%p246_p9), 1043456   ;;  %v287_v2 = vld [vmem:[%s1302_s1 + $0x8] sm:$0xff] (!%p246_p9)  ;;  %v288_v3 = vld [vmem:[%s1302_s1 + $0x10] sm:$0xff] (!%p246_p9)  ;;  %v606_v61 = vlaneseq (!%p246_p9) }
  0x10   : > { %249 = sbr.rel (%p246_p9) target bundleno = 955 (0x3bb), region = 44  ;;  %863 = vmatprep.mubr.msk.f32.mxu0 (!%p246_p9), %vm290_vm0, %v286_v0  ;;  %v289_v4 = vld [vmem:[%s1302_s1 + $0x18] sm:$0xff] (!%p246_p9)  ;;  %v396_v5 = vld [vmem:[%s1303_s2] sm:$0xff] (!%p246_p9)  ;;  %vm424_vm2 = vcmask (!%p246_p9), 261120   ;;  %v402_v7 = vld [vmem:[%s1304_s3 + $0x10] sm:$0xff] (!%p246_p9)  ;;  %v1066_v8 = vmov (!%p246_p9), 0  }
  0x11   : > { %877 = vmatprep.mubr.msk.f32.mxu1 (!%p246_p9), %vm424_vm2, %v396_v5  ;;  %v400_v6 = vld [vmem:[%s1304_s3] sm:$0xff] (!%p246_p9)  ;;  %962 = vset.pattern.permute.xlu0 (!%p246_p9), %v1066_v8  ;;  %v401_v9 = vld [vmem:[%s1304_s3 + $0x8] sm:$0xff] (!%p246_p9)  ;;  %v403_v10 = vld [vmem:[%s1304_s3 + $0x18] sm:$0xff] (!%p246_p9)  ;;  %v1067_v25 = vmov (!%p246_p9), 0.0|0.0   ;;  %vm1068_vm3 = vmmov (!%p246_p9), 0   ;;  %v1069_v26 = vmov (!%p246_p9), 0.0  }
  0x12   : > { %963 = vset.pattern.permute.xlu1 (!%p246_p9), %v1066_v8  ;;  %406 = vperm.xlu0 (!%p246_p9), %962, %v400_v6   ;;  %v527_v11 = vld [vmem:[%s1306_s5] sm:$0x3f] (!%p246_p9)  ;;  %v397_v22 = vld [vmem:[%s1303_s2 + $0x8] sm:$0xff] (!%p246_p9)  ;;  %v398_v23 = vld [vmem:[%s1303_s2 + $0x10] sm:$0xff] (!%p246_p9)  ;;  %vm629_vm4 = vcmask (!%p246_p9), 1042432   ;;  %s1218_s20 = sand.u32 (!%p246_p9), 1, %s1056_s25  }
  0x13   : > { %416 = vperm.xlu1 (!%p246_p9), %963, %v402_v7   ;;  %v399_v24 = vld [vmem:[%s1303_s2 + $0x18] sm:$0xff] (!%p246_p9)  ;;  %v526_v45 = vld [vmem:[%s1305_s4] sm:$0x3f] (!%p246_p9)  ;;  %v607_v63 = vshrl.u32 (!%p246_p9), %v606_v61, 7  ;;  %s834_s21 = sshll.u32 (!%p246_p9), %s1133_s28, 7  ;;  %s820_s22 = sshll.u32 (!%p246_p9), %s1218_s20, 3 }
  0x14   : > { %v618_v0 = vand.u32 (!%p246_p9), 127, %v606_v61  ;;  %s273_s23 = scalar_lea.vmem (!%p246_p9), [#allocation2], %s820_s22  ;;  %vm647_vm9 = vcmask (!%p246_p9), 1040384   ;;  %s1233_s9 = scalar_lea.hbm (!%p246_p9), %s1307_s6, %s834_s21 }
  0x15   : > { %vm608_vm5 = vcmp.lt.s32.totalorder (!%p246_p9), %v607_v63, 3  ;;  %s694_s13 = scalar_lea.sflag (!%p246_p9), [#allocation3], %s1218_s20 }
  0x16   : > { %411 = vperm.xlu0 (!%p246_p9), %962, %v401_v9  }
  0x17   : > { %s282_s15 = scalar_select %p281_p10, %s1133_s28, 2  ;;  %421 = vperm.xlu1 %963, %v403_v10  }
  0x19   : > { %s822_s16 = sshll.u32 %s282_s15, 3  ;;  %s1070_s15 = smov [#allocation2]  }
  0x1a   : > { %s1168_s19 = scalar_lea.vmem %s1301_s0, %s822_s16  ;;  %530 = vperm.xlu0 %962, %v527_v11   ;;  %s974_s16 = sshll.u32 %s1070_s15, 4  ;;  %s975_s16 = int_to_ptr.vmem [resolvable:$false] %s974_s16 }
  0x1b   : > { %v285_v1 = vld [vmem:[%s1168_s19] sm:$0xf]  ;;  %s976_s17 = scalar_lea.vmem %s975_s16, 256 }
  0x1c   : > { %861 = vmatprep.subr.msk.mxu0 %vm303_vm1, %v285_v1 }
  0x1d   : > { %862 = vmatpush3.msk.msra.mxu0 %vm303_vm1, %v285_v1  ;;  %v664_v1 = vsub.s32 0, %v607_v63 }
  0x1e   : > { %864 = vmatmul.mubr.msk.f32.vlgmr.msra.gmra.mrb[0].mxu0 %vm290_vm0, %v287_v2  ;;  %902 = vmatprep.subr.bf16.mxu0 %v1067_v25  ;;  %v620_v2 = vstv %s834_s21 }
  0x1f   : > { %866 = vmatprep.mubr.msk.f32.mxu0 %vm290_vm0, %v288_v3  ;;  %v658_v3 = vld [vmem:[%s1168_s19 + $0x7] sm:$0x1]  ;;  %v621_v7 = vadd.s32 %v620_v2, %v618_v0 }
  0x20   : > { %v665_v10 = vrot.slane %v658_v3, %v664_v1 }
  0x21   : > { %vm622_vm7 = vcmp.lt.s32.totalorder %v621_v7, 300 }
  0x22   : > { %867 = vmatmul.mubr.msk.f32.gmra.mrb[2].mxu0 %vm290_vm0, %v289_v4  ;;  %v659_v4 = vld [vmem:[%s1168_s19 + $0x4] sm:$0x7]  ;;  %s712_s19 = sshll.u32 %s273_s23, 4  ;;  %s713_s19 = int_to_ptr.vmem [resolvable:$true] %s712_s19 }
  0x23   : > { %891 = vmatprep.mubr.msk.f32.mxu0 %vm1068_vm3, %v1069_v26  ;;  %s970_s14 = scalar_lea.vmem %s713_s19, 128  ;;  %p977_p0 = scmp.lt.s32.totalorder %s713_s19, %s975_s16 }
  0x24   : > { %p971_p11 = scmp.ne.s32.totalorder %s713_s19, %s970_s14  ;;  %p978_p1 = scmp.lt.s32.totalorder %s976_s17, %s970_s14 }
  0x26   : > { %p972_p12 = pnand %p971_p11, %p1150_p5  ;;  %p979_p2 = por %p978_p1, %p977_p0 }
  0x28   : > { %p973_p13 = pneg %p972_p12 }
  0x2a   : > { %p980_p3 = pnand %p979_p2, %p973_p13 }
  0x91   : > { %v407_v27 = vpop.permute.xlu0 %406 }
  0x92   : > { %v417_v28 = vpop.permute.xlu1 %416 }
  0x95   : > { %v412_v29 = vpop.permute.xlu0 %411 }
  0x96   : > { %v422_v35 = vpop.permute.xlu1 %421 }
  0x99   : > { %v531_v46 = vpop.permute.xlu0 %530 }
  0xf1   : > { %v865_v12 = vpop.f32.mrb[0].mxu0 }
  0xf2   : > { %v393_v13 = vmax.f32 %v865_v12, 0.0  ;;  %v373_v14 = vpop.f32.mrb[1].mxu0 }
  0xf3   : > { %v392_v15 = vmax.f32 %v373_v14, 0.0 }
  0xf5   : > { %v868_v16 = vpop.f32.mrb[2].mxu0  ;;  %v894_v17 = vpack.c.bf16 %v393_v13, %v392_v15 }
  0xf6   : > { %v395_v18 = vmax.f32 %v868_v16, 0.0  ;;  %v383_v19 = vpop.f32.mrb[3].mxu0 }
  0xf7   : > { %v394_v20 = vmax.f32 %v383_v19, 0.0  ;;  %895 = vmatprep.subr.bf16.mxu1 %v894_v17  ;;  %v835_v19 = vsel %vm622_vm7, 1.0, %v1069_v26 }
  0xf8   : > { %897 = vmatpush3.bf16.msra.mxu1 %v894_v17 }
  0xf9   : > { %v898_v21 = vpack.c.bf16 %v395_v18, %v394_v20 }
  0xfb   : > { %899 = vmatprep.subr.bf16.mxu1 %v898_v21 }
  0xfc   : > { %901 = vmatpush3.bf16.msra.mxu1 %v898_v21  ;;  %v677_v21 = vsel %vm647_vm9, %v658_v3, 0.0 }
  0xff   : > { %878 = vmatmul.mubr.msk.f32.vlgmr.msra.gmra.mrb[0].mxu1 %vm424_vm2, %v397_v22 }
 0x100   : > { %880 = vmatprep.mubr.msk.f32.mxu1 %vm424_vm2, %v398_v23 }
 0x103   : > { %881 = vmatmul.mubr.msk.f32.gmra.mrb[2].mxu1 %vm424_vm2, %v399_v24 }
 0x1d2   : > { %v879_v30 = vpop.f32.mrb[0].mxu1 }
 0x1d3   : > { %v509_v31 = vadd.f32 %v879_v30, %v412_v29  ;;  %v503_v32 = vpop.f32.mrb[1].mxu1 }
 0x1d4   : > { %v504_v33 = vadd.f32 %v503_v32, %v407_v27 }
 0x1d5   : > { %v523_v34 = vmax.f32 %v509_v31, 0.0 }
 0x1d6   : > { %v522_v36 = vmax.f32 %v504_v33, 0.0  ;;  %v882_v37 = vpop.f32.mrb[2].mxu1 }
 0x1d7   : > { %v519_v38 = vadd.f32 %v882_v37, %v422_v35  ;;  %v513_v39 = vpop.f32.mrb[3].mxu1 }
 0x1d8   : > { %v903_v40 = vpack.c.bf16 %v523_v34, %v522_v36  ;;  %v514_v41 = vadd.f32 %v513_v39, %v417_v28 }
 0x1d9   : > { %v525_v42 = vmax.f32 %v519_v38, 0.0 }
 0x1da   : > { %v524_v43 = vmax.f32 %v514_v41, 0.0  ;;  %904 = vmatpush3.bf16.msra.mxu0 %v903_v40 }
 0x1db   : > { %905 = vmatprep.subr.bf16.mxu0 %v1067_v25 }
 0x1dc   : > { %v906_v44 = vpack.c.bf16 %v525_v42, %v524_v43 }
 0x1de   : > { %907 = vmatpush3.bf16.msra.mxu0 %v906_v44 }
 0x1e1   : > { %892 = vmatmul.mubr.msk.f32.vlgmr.msra.gmra.mrb[4].mxu0 %vm424_vm2, %v526_v45 }
 0x2b4   : > { %v602_v47 = vpop.f32.mrb[4].mxu0 }
 0x2b5   : > { %v603_v48 = vadd.f32 %v602_v47, %v531_v46  ;;  %v893_v49 = vpop.f32.mrb[5].mxu0 }
 0x2b7   : > { %v833_v50 = vmul.f32 -1.442695, %v603_v48  ;;  %v625_v51 = vmul.f32 %v603_v48, %v603_v48 }
 0x2b9   : > { %964 = vpow2.f32 %v833_v50  ;;  %v627_v52 = vrot.slane %v625_v51, 3 }
 0x2bb   : > { %v630_v53 = vsel %vm629_vm4, %v627_v52, 0.0 }
 0x2bc   : > { %v631_v54 = vrot.slane %v630_v53, 4 }
 0x2be   : > { %v632_v55 = vadd.f32 %v631_v54, %v630_v53 }
 0x2c0   : > { %v633_v56 = vrot.slane %v632_v55, 2 }
 0x2c2   : > { %v634_v57 = vadd.f32 %v633_v56, %v632_v55 }
 0x2c3   : > { %v965_v58 = vpop.eup %964 }
 0x2c4   : > { %v612_v59 = vadd.f32 1.0, %v965_v58  ;;  %v635_v60 = vrot.slane %v634_v57, 1 }
 0x2c6   : > { %966 = vrcp.f32 %v612_v59  ;;  %v636_v62 = vadd.f32 %v635_v60, %v634_v57 }
 0x2c8   : > { %968 = vrsqrt.f32 %v636_v62  ;;  %vm639_vm6 = vcmp.eq.f32.partialorder %v636_v62, inf  ;;  %v642_v13 = vand.u32 2147483648, %v636_v62  ;;  %vm641_vm8 = vcmp.eq.f32.partialorder %v636_v62, 0.0 }
 0x2d0   : > { %v967_v5 = vpop.eup %966 }
 0x2d1   : > { %v615_v6 = vsel %vm608_vm5, %v967_v5, %v603_v48 }
 0x2d2   : > { %v969_v8 = vpop.eup %968  ;;  %v660_v9 = vsub.f32 %v615_v6, %v659_v4  ;;  %616 = vst [vmem:[%s273_s23] sm:$0x3f] %v615_v6 }
 0x2d3   : > { %v638_v11 = vmul.f32 %v969_v8, %v636_v62 }
 0x2d4   : > { %v661_v12 = vmul.f32 %v660_v9, %v660_v9 }
 0x2d5   : > { %v640_v14 = vsel %vm639_vm6, %v636_v62, %v638_v11 }
 0x2d6   : > { %v666_v15 = vmul.f32 %v665_v10, %v661_v12  ;;  %v643_v16 = vsel %vm641_vm8, %v642_v13, %v640_v14 }
 0x2d7   : > { %v836_v17 = vadd.f32 -1.0, %v643_v16 }
 0x2d8   : > { %v667_v18 = vsel %vm629_vm4, %v666_v15, 0.0 }
 0x2d9   : > { %668 = vadd.xlane.f32.xlu0 %v667_v18  ;;  %v645_v20 = vmul.f32 %v836_v17, %v836_v17 }
 0x2db   : > { %v646_v22 = vmul.f32 %v835_v19, %v645_v20 }
 0x2dd   : > { %678 = vadd.xlane.f32.xlu0 %v677_v21  ;;  %v648_v23 = vsel %vm647_vm9, %v646_v22, 0.0 }
 0x2de   : > { %649 = vadd.xlane.f32.xlu1 %v648_v23 }
 0x2df   : > { %983 = shalt.err (!%p980_p3)
}
 0x2e0   : > { %s984_s18 = scalar_lea.hbm %s1233_s9, 128  ;;  %s988_s23 = scalar_lea.hbm %s1307_s6, 384 }
 0x2e1   : > { %p985_p4 = scmp.ne.s32.totalorder %s1233_s9, %s984_s18  ;;  %p989_p9 = scmp.lt.u32.totalorder %s1233_s9, %s1307_s6 }
 0x2e2   : > { %p990_p10 = scmp.lt.u32.totalorder %s988_s23, %s984_s18  ;;  %p992_p12 = scmp.lt.u32.totalorder %s984_s18, %s1233_s9 }
 0x2e3   : > { %p986_p7 = pnand %p985_p4, %p1150_p5 }
 0x2e4   : > { %p991_p11 = por %p990_p10, %p989_p9 }
 0x2e5   : > { %p987_p8 = pneg %p986_p7 }
 0x2e6   : > { %p993_p13 = por %p992_p12, %p991_p11 }
 0x2e8   : > { %p994_p0 = pnand %p993_p13, %p987_p8 }
 0x2ea   : > { %997 = shalt.err (!%p994_p0)
}
 0x2eb   : > { %914 = dma.vmem_to_hbm [thread:$0]  (%p1150_p5), %s713_s19, 128, %s1233_s9, %s694_s13  }
 0x2ec   : > { %s821_s19 = sshll.u32 %s1218_s20, 2  ;;  %s840_s9 = sshll.u32 %s1133_s28, 6 }
 0x2ed   : > { %s280_s13 = scalar_lea.vmem [#allocation4], %s821_s19  ;;  %s1258_s21 = scalar_lea.hbm %s1308_s7, %s840_s9 }
 0x2ee   : > { %s725_s14 = sshll.u32 %s280_s13, 4  ;;  %s699_s28 = scalar_lea.sflag [#allocation5], %s1218_s20  ;;  %s1260_s14 = int_to_ptr.vmem [resolvable:$true] %s725_s14 }
 0x2ef   : > { %s998_s23 = scalar_lea.vmem %s1260_s14, 64  ;;  %s1071_s29 = smov [#allocation4]  }
 0x2f0   : > { %p999_p1 = scmp.ne.s32.totalorder %s1260_s14, %s998_s23  ;;  %s1002_s8 = sshll.u32 %s1071_s29, 4  ;;  %s1003_s8 = int_to_ptr.vmem [resolvable:$false] %s1002_s8 }
 0x2f1   : > { %s1004_s19 = scalar_lea.vmem %s1003_s8, 128  ;;  %p1005_p4 = scmp.lt.s32.totalorder %s1260_s14, %s1003_s8 }
 0x2f2   : > { %p1000_p2 = pnand %p999_p1, %p1150_p5  ;;  %p1006_p7 = scmp.lt.s32.totalorder %s1004_s19, %s998_s23 }
 0x2f4   : > { %p1001_p3 = pneg %p1000_p2  ;;  %p1007_p8 = por %p1006_p7, %p1005_p4 }
 0x2f6   : > { %p1008_p9 = pnand %p1007_p8, %p1001_p3 }
 0x366   : > { %v669_v24 = vpop.xlane.xlu0 %668 }
 0x367   : > { %v670_v25 = vrot.slane %v669_v24, 4 }
 0x369   : > { %v671_v26 = vadd.f32 %v670_v25, %v669_v24 }
 0x36a   : > { %v679_v27 = vpop.xlane.xlu0 %678 }
 0x36b   : > { %v672_v28 = vrot.slane %v671_v26, 2  ;;  %v680_v29 = vrot.slane %v679_v27, 4  ;;  %v650_v30 = vpop.xlane.xlu1 %649 }
 0x36c   : > { %v651_v31 = vrot.slane %v650_v30, 4 }
 0x36d   : > { %v681_v32 = vadd.f32 %v680_v29, %v679_v27  ;;  %v673_v35 = vadd.f32 %v672_v28, %v671_v26 }
 0x36e   : > { %v652_v33 = vadd.f32 %v651_v31, %v650_v30 }
 0x36f   : > { %v682_v34 = vrot.slane %v681_v32, 2  ;;  %v674_v39 = vrot.slane %v673_v35, 1 }
 0x370   : > { %v653_v36 = vrot.slane %v652_v33, 2 }
 0x371   : > { %v683_v37 = vadd.f32 %v682_v34, %v681_v32  ;;  %v675_v44 = vadd.f32 %v674_v39, %v673_v35 }
 0x372   : > { %v654_v38 = vadd.f32 %v653_v36, %v652_v33 }
 0x373   : > { %v684_v40 = vrot.slane %v683_v37, 1 }
 0x374   : > { %v655_v41 = vrot.slane %v654_v38, 1 }
 0x375   : > { %v685_v43 = vadd.f32 %v684_v40, %v683_v37 }
 0x376   : > { %v656_v42 = vadd.f32 %v655_v41, %v654_v38 }
 0x378   : > { %908 = vpush %v656_v42 }
 0x379   : > { %910 = vpush %v675_v44 }
 0x37a   : > { %912 = vpush %v685_v43 }
 0x3a9   : > { %s909_s15 = spop %908 }
 0x3aa   : > { %v687_v45 = vstv %s909_s15  ;;  %s911_s16 = spop %910 }
 0x3ab   : > { %688 = vst [vmem:[%s280_s13] sm:$0x1] %v687_v45  ;;  %v689_v46 = vstv %s911_s16  ;;  %s913_s22 = spop %912 }
 0x3ac   : > { %690 = vst [vmem:[%s280_s13 + $0x1] sm:$0x1] %v689_v46  ;;  %v691_v47 = vstv %s913_s22 }
 0x3ad   : > { %692 = vst [vmem:[%s280_s13 + $0x2] sm:$0x1] %v691_v47 }
 0x3ae   : > { %1011 = shalt.err (!%p1008_p9)
}
 0x3af   : > { %s1012_s20 = scalar_lea.hbm %s1258_s21, 64  ;;  %s1016_s15 = scalar_lea.hbm %s1308_s7, 192 }
 0x3b0   : > { %p1013_p10 = scmp.ne.s32.totalorder %s1258_s21, %s1012_s20  ;;  %p1017_p13 = scmp.lt.u32.totalorder %s1258_s21, %s1308_s7 }
 0x3b1   : > { %p1018_p0 = scmp.lt.u32.totalorder %s1016_s15, %s1012_s20  ;;  %p1020_p2 = scmp.lt.u32.totalorder %s1012_s20, %s1258_s21 }
 0x3b2   : > { %p1014_p11 = pnand %p1013_p10, %p1150_p5 }
 0x3b3   : > { %p1019_p1 = por %p1018_p0, %p1017_p13 }
 0x3b4   : > { %p1015_p12 = pneg %p1014_p11 }
 0x3b5   : > { %p1021_p3 = por %p1020_p2, %p1019_p1 }
 0x3b7   : > { %p1022_p4 = pnand %p1021_p3, %p1015_p12 }
 0x3b9   : > { %1025 = shalt.err (!%p1022_p4)
}
 0x3ba   : > { %915 = dma.vmem_to_hbm [thread:$0]  (%p1150_p5), %s1260_s14, 64, %s1258_s21, %s699_s28  }
 0x3bb PF: > { %p925_p7 = scmp.ge.s32.totalorder %s1064_s27, 2  ;;  %s737_s18 = sand.u32 1, %s1052_s24  }
 0x3bc   : > { %s738_s22 = scalar_lea.sflag [#allocation3], %s737_s18 }
 0x3bd   : > { %p919_p8 = pnand %p925_p7, %p1154_p6 }
 0x3bf   : > { %1043 = dma.done.wait (!%p919_p8), %s738_s22, 128  }
 0x3c0   : > { %1045 = vsyncadd (!%p919_p8), %s738_s22, 4294967168  ;;  %s747_s23 = scalar_lea.sflag [#allocation5], %s737_s18 }
 0x3c1   : > { %1047 = dma.done.wait (!%p919_p8), %s747_s23, 64  }
 0x3c2   : > { %1049 = vsyncadd (!%p919_p8), %s747_s23, 4294967232  ;;  %p21_p5 = scmp.ge.s32.totalorder %s1137_s30, 5   ;;  %s1311_s24 = smov %s1056_s25 }
 0x3c3   : > { %s1312_s25 = smov %s1060_s26  ;;  %s1313_s26 = smov %s1148_s10 }
 0x3c4   : > { %s1314_s27 = smov %s1137_s30  ;;  %23 = sbr.rel (!%p21_p5) target bundleno = 5 (0x5), region = 96 }
 0x3cb   :  { %752 = vsyncpa [#allocation3], 1 }
 0x3cc   :  { %754 = vsyncpa [#allocation3 + $0x1], 1 }
 0x3cd   :  { %755 = vsyncpa [#allocation5], 1 }
 0x3ce   :  { %757 = vsyncpa [#allocation5 + $0x1], 1 }

</bundles_post_ra>
